<compile_context>
chip_gen: v6e
topology: v6e:2x2x1
jax: 0.10.0
libtpu: 0.0.40
codegen_flags: <defaults>
</compile_context>

<pallas_src>
import numpy as np
import jax
import jax.numpy as jnp
from jax.experimental import pallas as pl
from jax.experimental.pallas import tpu as pltpu

DIRS = ((-1, 0), (1, 0), (0, -1), (0, 1))
K = 1                        # number of value-propagation sweeps (as in the source)

H, W = 8, 8
OBS_SHAPE = (3, H, W)
N_STATE = H * W              # 64
N_OBS_FLAT = 3 * H * W       # 192
HIDDEN1 = 32
HIDDEN2 = 64
HIDDEN_POLICY = 32
N_ACTIONS = len(DIRS)        # 4

LANES = 128                  # TPU lane width; every padded feature axis uses it
NEG_LOGIT = -1e9             # softmax padding so padded lanes give exp() == 0

# ---- bf16 weight slab layout (rows x 128 lanes) ----------------------------
R_W1 = 0                         # (192, 128): w1 in [:192, :32]
R_W2 = R_W1 + N_OBS_FLAT         # (128, 128): w2 in [:32, :64]
R_WROI = R_W2 + LANES            # (128, 128): wro in [:64, 0:64], wri in [:64, 64:128]
R_WP1V = R_WROI + LANES          # (128, 128): wp1[0:64]   in [:64, :32]
R_WP1ROI = R_WP1V + LANES        # (128, 128): wp1[64:128] in [:64, :32], wp1[128:192] in [64:128, :32]
R_WPH = R_WP1ROI + LANES         # (128, 128): wph in [:32, :4]
SLAB_ROWS = R_WPH + LANES        # 832 rows * 128 lanes * 2B  ~= 213 KB

# ---- f32 aux slab layout (biases, logit padding, direction masks) ----------
A_B1, A_B2, A_BROI, A_BP1, A_BPH = 0, 1, 2, 3, 4
A_MASK = 8                       # rows 8..11: one 0/1 validity mask per direction
AUX_ROWS = 16


def _build_dir_masks():
    """(4, 128) float 0/1 validity mask per direction (lane q = i*W + j)."""
    q = np.arange(LANES)
    row, col = q // W, q % W
    on_board = q < N_STATE
    masks = np.zeros((len(DIRS), LANES), np.float32)
    for d, (di, dj) in enumerate(DIRS):
        valid = (on_board & (row + di >= 0) & (row + di < H)
                 & (col + dj >= 0) & (col + dj < W))
        masks[d] = valid.astype(np.float32)
    return masks


def _embedding_kernel(x_ref, w_ref, aux_ref, out_ref):
    x = x_ref[...]                                   # (TB, 192) bf16
    aux = aux_ref[...]                               # (16, 128) f32

    # MLP trunk: bf16 operands into the MXU, f32 accumulation, f32 elementwise.
    h1 = jnp.maximum(
        jnp.dot(x, w_ref[R_W1:R_W1 + N_OBS_FLAT, :],
                preferred_element_type=jnp.float32) + aux[A_B1:A_B1 + 1, :], 0.0)
    h2 = jnp.maximum(
        jnp.dot(h1.astype(jnp.bfloat16), w_ref[R_W2:R_W2 + LANES, :],
                preferred_element_type=jnp.float32) + aux[A_B2:A_B2 + 1, :], 0.0)
    # Fused r_out|r_in: lanes 0:64 = r_out, lanes 64:128 = r_in.
    r_comb = (jnp.dot(h2.astype(jnp.bfloat16), w_ref[R_WROI:R_WROI + LANES, :],
                      preferred_element_type=jnp.float32)
              + aux[A_BROI:A_BROI + 1, :])

    # delta[q] = r_in[q] - r_out[q] for q < 64 (lanes >= 64 are garbage but the
    # direction masks are 0 there, so they are never selected).
    delta = pltpu.roll(r_comb, 64, axis=1) - r_comb

    # Value propagation (K == 1 => v_current == 0): each VALID direction
    # overwrites v with max(0, delta[neighbor]) — last valid direction wins,
    # matching the literal source loops.
    v = jnp.zeros_like(delta)
    for d, (di, dj) in enumerate(DIRS):
        shift = (-(di * W + dj)) % LANES
        cand = pltpu.roll(delta, shift, axis=1)      # cand[q] = delta[q + di*W + dj]
        mask = aux[A_MASK + d:A_MASK + d + 1, :] > 0.5
        v = jnp.where(mask, jnp.maximum(cand, 0.0), v)

    # Policy head: cat(v, r_out, r_in) @ wp1 expressed as two summed matmuls.
    a1 = (jnp.dot(v.astype(jnp.bfloat16), w_ref[R_WP1V:R_WP1V + LANES, :],
                  preferred_element_type=jnp.float32)
          + jnp.dot(r_comb.astype(jnp.bfloat16), w_ref[R_WP1ROI:R_WP1ROI + LANES, :],
                    preferred_element_type=jnp.float32)
          + aux[A_BP1:A_BP1 + 1, :])
    # NOTE: no nonlinearity between the two policy layers (matches the source).
    logits = (jnp.dot(a1.astype(jnp.bfloat16), w_ref[R_WPH:R_WPH + LANES, :],
                      preferred_element_type=jnp.float32)
              + aux[A_BPH:A_BPH + 1, :])             # lanes >= 4: -1e9
    e = jnp.exp(logits - jnp.max(logits, axis=-1, keepdims=True))  # padded lanes -> 0
    prob = e * pl.reciprocal(jnp.sum(e, axis=-1, keepdims=True), approx=True)

    # Single lane-dense packed output: v in lanes 0:64, probs in lanes 64:68.
    # v is exactly 0 for lanes >= 64 and prob is exactly 0 for lanes >= 4, so a
    # plain add packs them with no select.
    out_ref[...] = v + pltpu.roll(prob, 64, axis=1)


def pack_params(params):
    """Pack weights into one bf16 (832,128) slab + one f32 (16,128) aux slab."""
    slab = np.zeros((SLAB_ROWS, LANES), np.float32)
    slab[R_W1:R_W1 + N_OBS_FLAT, :HIDDEN1] = np.asarray(params['w1'])
    slab[R_W2:R_W2 + HIDDEN1, :HIDDEN2] = np.asarray(params['w2'])
    slab[R_WROI:R_WROI + HIDDEN2, :N_STATE] = np.asarray(params['wro'])
    slab[R_WROI:R_WROI + HIDDEN2, N_STATE:2 * N_STATE] = np.asarray(params['wri'])
    wp1 = np.asarray(params['wp1'])                  # (192, 32): rows = [v | r_out | r_in]
    slab[R_WP1V:R_WP1V + N_STATE, :HIDDEN_POLICY] = wp1[:N_STATE]
    slab[R_WP1ROI:R_WP1ROI + N_STATE, :HIDDEN_POLICY] = wp1[N_STATE:2 * N_STATE]
    slab[R_WP1ROI + N_STATE:R_WP1ROI + 2 * N_STATE, :HIDDEN_POLICY] = wp1[2 * N_STATE:]
    slab[R_WPH:R_WPH + HIDDEN_POLICY, :N_ACTIONS] = np.asarray(params['wph'])

    aux = np.zeros((AUX_ROWS, LANES), np.float32)
    aux[A_B1, :HIDDEN1] = np.asarray(params['b1'])
    aux[A_B2, :HIDDEN2] = np.asarray(params['b2'])
    aux[A_BROI, :N_STATE] = np.asarray(params['bro'])
    aux[A_BROI, N_STATE:2 * N_STATE] = np.asarray(params['bri'])
    aux[A_BP1, :HIDDEN_POLICY] = np.asarray(params['bp1'])
    aux[A_BPH, :] = NEG_LOGIT
    aux[A_BPH, :N_ACTIONS] = np.asarray(params['bph'])
    aux[A_MASK:A_MASK + N_ACTIONS, :] = _build_dir_masks()
    return jnp.asarray(slab, jnp.bfloat16), jnp.asarray(aux, jnp.float32)


def _round_up(x, m):
    return ((x + m - 1) // m) * m


def _tile_config(B):
    """(block_b, padded_b): 512-row tiles for big batches (~85% of HBM
    roofline); mid-size batches split into >=2 tiles so v7x's two TensorCores
    both get work; tiny batches use one multiple-of-16 tile."""
    if B > 512:
        block_b = 512
    elif B >= 256:
        block_b = _round_up((B + 1) // 2, 128)
    else:
        block_b = _round_up(B, 16)
    return block_b, _round_up(B, block_b)


def embedding_forward_batch(x_batch, packed_params):
    """Batched forward. x_batch: (B, 3, H, W) f32.
    Returns (action_prob (B, 4), state_values (B, 1, 2, W)) — the torch
    module's (action_prob, v_current[current_position]) per observation."""
    w_slab, aux = packed_params
    B = x_batch.shape[0]
    block_b, padded_b = _tile_config(B)

    x_flat = x_batch.reshape(B, N_OBS_FLAT).astype(jnp.bfloat16)
    x_pad = jnp.pad(x_flat, ((0, padded_b - B), (0, 0)))

    out = pl.pallas_call(
        _embedding_kernel,
        out_shape=jax.ShapeDtypeStruct((padded_b, LANES), jnp.float32),
        grid_spec=pltpu.PrefetchScalarGridSpec(
            num_scalar_prefetch=0,
            grid=(padded_b // block_b,),
            in_specs=[
                pl.BlockSpec((block_b, N_OBS_FLAT), lambda i: (i, 0)),
                pl.BlockSpec((SLAB_ROWS, LANES), lambda i: (0, 0)),   # weights: constant map
                pl.BlockSpec((AUX_ROWS, LANES), lambda i: (0, 0)),    # biases/masks
            ],
            out_specs=pl.BlockSpec((block_b, LANES), lambda i: (i, 0)),
        ),
        compiler_params=pltpu.CompilerParams(dimension_semantics=("parallel",)),
    )(x_pad, w_slab, aux)

    v_boards = out[:B, :N_STATE].reshape(B, H, W)
    action_prob = out[:B, N_STATE:N_STATE + N_ACTIONS]

    # current_position = (x[1] == 1).nonzero(), computed on device (jittable).
    pos_flat = jnp.argmax((x_batch[:, 1].reshape(B, N_STATE) == 1.0).astype(jnp.int32), axis=-1)
    current_position = jnp.stack([pos_flat // W, pos_flat % W], axis=-1)[:, None, :]  # (B,1,2)
    # Reproduces torch advanced indexing v_current[cp] (indexes dim 0 -> (1, 2, W)).
    state_values = jax.vmap(lambda vb, cp: vb[cp])(v_boards, current_position)
    return action_prob, state_values


def embedding_forward(x, packed_params):
    """Single-observation forward matching the torch module's signature."""
    prob, sv = embedding_forward_batch(x[None], packed_params)
    return prob[0], sv[0]


def init_params(key):
    """Deterministic torch-default-style init: U(-1/sqrt(fan_in), 1/sqrt(fan_in))."""
    def linear(k, fan_in, fan_out):
        kw, kb = jax.random.split(k)
        bound = 1.0 / np.sqrt(fan_in)
        w = jax.random.uniform(kw, (fan_in, fan_out), jnp.float32, -bound, bound)
        b = jax.random.uniform(kb, (fan_out,), jnp.float32, -bound, bound)
        return w, b

    keys = jax.random.split(key, 6)
    p = {}
    p['w1'], p['b1'] = linear(keys[0], N_OBS_FLAT, HIDDEN1)
    p['w2'], p['b2'] = linear(keys[1], HIDDEN1, HIDDEN2)
    p['wro'], p['bro'] = linear(keys[2], HIDDEN2, N_STATE)
    p['wri'], p['bri'] = linear(keys[3], HIDDEN2, N_STATE)
    p['wp1'], p['bp1'] = linear(keys[4], N_STATE * 3, HIDDEN_POLICY)
    p['wph'], p['bph'] = linear(keys[5], HIDDEN_POLICY, N_ACTIONS)
    return p


def _reference_forward(x_np, p):
    """Literal float64 numpy transcription of the torch forward (validation only)."""
    xf = x_np.reshape(-1)
    h1 = np.maximum(xf @ p['w1'] + p['b1'], 0.0)
    h2 = np.maximum(h1 @ p['w2'] + p['b2'], 0.0)
    r_out = (h2 @ p['wro'] + p['bro']).reshape(H, W)
    r_in = (h2 @ p['wri'] + p['bri']).reshape(H, W)
    v_cur = np.zeros((H, W))
    v_next = np.zeros((H, W))
    for _ in range(K):
        for i in range(H):
            for j in range(W):
                for di, dj in DIRS:
                    ni, nj = i + di, j + dj
                    if 0 <= ni < H and 0 <= nj < W:
                        v_next[i, j] = max(v_cur[i, j],
                                           v_cur[ni, nj] + r_in[ni, nj] - r_out[ni, nj])
        v_cur = v_next
    pol_in = np.concatenate([v_cur.reshape(-1), r_out.reshape(-1), r_in.reshape(-1)])
    logits = (pol_in @ p['wp1'] + p['bp1']) @ p['wph'] + p['bph']
    e = np.exp(logits - logits.max())
    prob = e / e.sum()
    cp = np.argwhere(x_np[1] == 1.0)             # (1, 2)
    state_values = v_cur[cp]                     # (1, 2, W) — torch indexing semantics
    return prob, state_values


if __name__ == "__main__":
    key = jax.random.PRNGKey(0)
    pkey, xkey, poskey = jax.random.split(key, 3)
    params = init_params(pkey)
    packed = pack_params(params)

    # Small deterministic batch of (3, 8, 8) observations; channel 1 has exactly
    # one cell == 1 (the agent position) per observation.
    B = 8
    xs = jax.random.uniform(xkey, (B,) + OBS_SHAPE, jnp.float32)
    pos = jax.random.randint(poskey, (B,), 0, N_STATE)
    agent = jax.nn.one_hot(pos, N_STATE, dtype=jnp.float32).reshape(B, H, W)
    xs = xs.at[:, 1].set(agent)

    fwd = jax.jit(embedding_forward_batch)
    action_prob, state_values = fwd(xs, packed)
    jax.block_until_ready((action_prob, state_values))

    # Validate against a literal float64 transcription of the torch module.
    # Tolerances cover bf16 MXU operands + approx reciprocal in the softmax.
    p64 = {k: np.asarray(v, np.float64) for k, v in params.items()}
    xs64 = np.asarray(xs, np.float64)
    for b in range(B):
        prob_ref, sv_ref = _reference_forward(xs64[b], p64)
        np.testing.assert_allclose(np.asarray(action_prob[b]), prob_ref, rtol=5e-2, atol=3e-2)
        np.testing.assert_allclose(np.asarray(state_values[b]), sv_ref, rtol=5e-2, atol=5e-2)

    print("KERNEL_OK")
</pallas_src>

<mosaic_0001>
module attributes {stable_mosaic.version = 11 : i64} {
  func.func @_embedding_kernel(%arg0: i32, %arg1: memref<16x192xbf16, #tpu.memory_space<vmem>>, %arg2: memref<832x128xbf16, #tpu.memory_space<vmem>>, %arg3: memref<16x128xf32, #tpu.memory_space<vmem>>, %arg4: memref<16x128xf32, #tpu.memory_space<vmem>>) attributes {dimension_semantics = [#tpu.dimension_semantics<parallel>], iteration_bounds = array<i64: 1>, scalar_prefetch = 0 : i64, scratch_operands = 0 : i64, tpu.core_type = #tpu.core_type<tc>, window_params = [{transform_indices = @transform_0, window_bounds = array<i64: 16, 192>}, {pipeline_mode = #tpu.pipeline_mode<synchronous>, transform_indices = @transform_1, window_bounds = array<i64: 832, 128>}, {pipeline_mode = #tpu.pipeline_mode<synchronous>, transform_indices = @transform_2, window_bounds = array<i64: 16, 128>}, {transform_indices = @transform_3, window_bounds = array<i64: 16, 128>}]} {
    %c0 = arith.constant 0 : index
    %c0_0 = arith.constant 0 : index
    %0 = vector.load %arg1[%c0, %c0_0] : memref<16x192xbf16, #tpu.memory_space<vmem>>, vector<16x192xbf16>
    %c0_1 = arith.constant 0 : index
    %c0_2 = arith.constant 0 : index
    %1 = vector.load %arg3[%c0_1, %c0_2] : memref<16x128xf32, #tpu.memory_space<vmem>>, vector<16x128xf32>
    %c0_3 = arith.constant 0 : index
    %c0_4 = arith.constant 0 : index
    %2 = vector.load %arg2[%c0_3, %c0_4] : memref<832x128xbf16, #tpu.memory_space<vmem>>, vector<192x128xbf16>
    %cst = arith.constant dense<0.000000e+00> : vector<16x128xf32>
    %3 = tpu.matmul %0, %2, %cst {dimension_numbers = #tpu.dot_dimension_numbers<[1], [0], [0], [1], [0, 0, 1, 1], [], []>} : vector<16x192xbf16>, vector<192x128xbf16>, vector<16x128xf32> -> vector<16x128xf32>
    %4 = vector.extract_strided_slice %1 {offsets = [0, 0], sizes = [1, 128], strides = [1, 1]} : vector<16x128xf32> to vector<1x128xf32>
    %5 = vector.broadcast %4 : vector<1x128xf32> to vector<16x128xf32>
    %6 = arith.addf %3, %5 : vector<16x128xf32>
    %cst_5 = arith.constant 0.000000e+00 : f32
    %7 = vector.broadcast %cst_5 : f32 to vector<16x128xf32>
    %8 = arith.maximumf %6, %7 : vector<16x128xf32>
    %9 = arith.truncf %8 : vector<16x128xf32> to vector<16x128xbf16>
    %c192 = arith.constant 192 : index
    %c0_6 = arith.constant 0 : index
    %10 = vector.load %arg2[%c192, %c0_6] : memref<832x128xbf16, #tpu.memory_space<vmem>>, vector<128x128xbf16>
    %cst_7 = arith.constant dense<0.000000e+00> : vector<16x128xf32>
    %11 = tpu.matmul %9, %10, %cst_7 {dimension_numbers = #tpu.dot_dimension_numbers<[1], [0], [0], [1], [0, 0, 1, 1], [], []>} : vector<16x128xbf16>, vector<128x128xbf16>, vector<16x128xf32> -> vector<16x128xf32>
    %12 = vector.extract_strided_slice %1 {offsets = [1, 0], sizes = [1, 128], strides = [1, 1]} : vector<16x128xf32> to vector<1x128xf32>
    %13 = vector.broadcast %12 : vector<1x128xf32> to vector<16x128xf32>
    %14 = arith.addf %11, %13 : vector<16x128xf32>
    %cst_8 = arith.constant 0.000000e+00 : f32
    %15 = vector.broadcast %cst_8 : f32 to vector<16x128xf32>
    %16 = arith.maximumf %14, %15 : vector<16x128xf32>
    %17 = arith.truncf %16 : vector<16x128xf32> to vector<16x128xbf16>
    %c320 = arith.constant 320 : index
    %c0_9 = arith.constant 0 : index
    %18 = vector.load %arg2[%c320, %c0_9] : memref<832x128xbf16, #tpu.memory_space<vmem>>, vector<128x128xbf16>
    %cst_10 = arith.constant dense<0.000000e+00> : vector<16x128xf32>
    %19 = tpu.matmul %17, %18, %cst_10 {dimension_numbers = #tpu.dot_dimension_numbers<[1], [0], [0], [1], [0, 0, 1, 1], [], []>} : vector<16x128xbf16>, vector<128x128xbf16>, vector<16x128xf32> -> vector<16x128xf32>
    %20 = vector.extract_strided_slice %1 {offsets = [2, 0], sizes = [1, 128], strides = [1, 1]} : vector<16x128xf32> to vector<1x128xf32>
    %21 = vector.broadcast %20 : vector<1x128xf32> to vector<16x128xf32>
    %22 = arith.addf %19, %21 : vector<16x128xf32>
    %c64_i32 = arith.constant 64 : i32
    %23 = tpu.dynamic_rotate %22 by %c64_i32 dim 1 : vector<16x128xf32>, i32 -> vector<16x128xf32>
    %24 = arith.subf %23, %22 : vector<16x128xf32>
    %cst_11 = arith.constant 0.000000e+00 : f32
    %25 = vector.broadcast %cst_11 : f32 to vector<16x128xf32>
    %c8_i32 = arith.constant 8 : i32
    %26 = tpu.dynamic_rotate %24 by %c8_i32 dim 1 : vector<16x128xf32>, i32 -> vector<16x128xf32>
    %27 = vector.extract_strided_slice %1 {offsets = [8, 0], sizes = [1, 128], strides = [1, 1]} : vector<16x128xf32> to vector<1x128xf32>
    %cst_12 = arith.constant 5.000000e-01 : f32
    %28 = vector.broadcast %cst_12 : f32 to vector<1x128xf32>
    %29 = arith.cmpf ogt, %27, %28 : vector<1x128xf32>
    %cst_13 = arith.constant 0.000000e+00 : f32
    %30 = vector.broadcast %cst_13 : f32 to vector<16x128xf32>
    %31 = arith.maximumf %26, %30 : vector<16x128xf32>
    %32 = vector.shape_cast %29 : vector<1x128xi1> to vector<1x128xi1>
    %33 = vector.broadcast %32 : vector<1x128xi1> to vector<16x128xi1>
    %34 = arith.select %33, %31, %25 : vector<16x128xi1>, vector<16x128xf32>
    %c120_i32 = arith.constant 120 : i32
    %35 = tpu.dynamic_rotate %24 by %c120_i32 dim 1 : vector<16x128xf32>, i32 -> vector<16x128xf32>
    %36 = vector.extract_strided_slice %1 {offsets = [9, 0], sizes = [1, 128], strides = [1, 1]} : vector<16x128xf32> to vector<1x128xf32>
    %cst_14 = arith.constant 5.000000e-01 : f32
    %37 = vector.broadcast %cst_14 : f32 to vector<1x128xf32>
    %38 = arith.cmpf ogt, %36, %37 : vector<1x128xf32>
    %cst_15 = arith.constant 0.000000e+00 : f32
    %39 = vector.broadcast %cst_15 : f32 to vector<16x128xf32>
    %40 = arith.maximumf %35, %39 : vector<16x128xf32>
    %41 = vector.shape_cast %38 : vector<1x128xi1> to vector<1x128xi1>
    %42 = vector.broadcast %41 : vector<1x128xi1> to vector<16x128xi1>
    %43 = arith.select %42, %40, %34 : vector<16x128xi1>, vector<16x128xf32>
    %c1_i32 = arith.constant 1 : i32
    %44 = tpu.dynamic_rotate %24 by %c1_i32 dim 1 : vector<16x128xf32>, i32 -> vector<16x128xf32>
    %45 = vector.extract_strided_slice %1 {offsets = [10, 0], sizes = [1, 128], strides = [1, 1]} : vector<16x128xf32> to vector<1x128xf32>
    %cst_16 = arith.constant 5.000000e-01 : f32
    %46 = vector.broadcast %cst_16 : f32 to vector<1x128xf32>
    %47 = arith.cmpf ogt, %45, %46 : vector<1x128xf32>
    %cst_17 = arith.constant 0.000000e+00 : f32
    %48 = vector.broadcast %cst_17 : f32 to vector<16x128xf32>
    %49 = arith.maximumf %44, %48 : vector<16x128xf32>
    %50 = vector.shape_cast %47 : vector<1x128xi1> to vector<1x128xi1>
    %51 = vector.broadcast %50 : vector<1x128xi1> to vector<16x128xi1>
    %52 = arith.select %51, %49, %43 : vector<16x128xi1>, vector<16x128xf32>
    %c127_i32 = arith.constant 127 : i32
    %53 = tpu.dynamic_rotate %24 by %c127_i32 dim 1 : vector<16x128xf32>, i32 -> vector<16x128xf32>
    %54 = vector.extract_strided_slice %1 {offsets = [11, 0], sizes = [1, 128], strides = [1, 1]} : vector<16x128xf32> to vector<1x128xf32>
    %cst_18 = arith.constant 5.000000e-01 : f32
    %55 = vector.broadcast %cst_18 : f32 to vector<1x128xf32>
    %56 = arith.cmpf ogt, %54, %55 : vector<1x128xf32>
    %cst_19 = arith.constant 0.000000e+00 : f32
    %57 = vector.broadcast %cst_19 : f32 to vector<16x128xf32>
    %58 = arith.maximumf %53, %57 : vector<16x128xf32>
    %59 = vector.shape_cast %56 : vector<1x128xi1> to vector<1x128xi1>
    %60 = vector.broadcast %59 : vector<1x128xi1> to vector<16x128xi1>
    %61 = arith.select %60, %58, %52 : vector<16x128xi1>, vector<16x128xf32>
    %62 = arith.truncf %61 : vector<16x128xf32> to vector<16x128xbf16>
    %c448 = arith.constant 448 : index
    %c0_20 = arith.constant 0 : index
    %63 = vector.load %arg2[%c448, %c0_20] : memref<832x128xbf16, #tpu.memory_space<vmem>>, vector<128x128xbf16>
    %cst_21 = arith.constant dense<0.000000e+00> : vector<16x128xf32>
    %64 = tpu.matmul %62, %63, %cst_21 {dimension_numbers = #tpu.dot_dimension_numbers<[1], [0], [0], [1], [0, 0, 1, 1], [], []>} : vector<16x128xbf16>, vector<128x128xbf16>, vector<16x128xf32> -> vector<16x128xf32>
    %65 = arith.truncf %22 : vector<16x128xf32> to vector<16x128xbf16>
    %c576 = arith.constant 576 : index
    %c0_22 = arith.constant 0 : index
    %66 = vector.load %arg2[%c576, %c0_22] : memref<832x128xbf16, #tpu.memory_space<vmem>>, vector<128x128xbf16>
    %cst_23 = arith.constant dense<0.000000e+00> : vector<16x128xf32>
    %67 = tpu.matmul %65, %66, %cst_23 {dimension_numbers = #tpu.dot_dimension_numbers<[1], [0], [0], [1], [0, 0, 1, 1], [], []>} : vector<16x128xbf16>, vector<128x128xbf16>, vector<16x128xf32> -> vector<16x128xf32>
    %68 = arith.addf %64, %67 : vector<16x128xf32>
    %69 = vector.extract_strided_slice %1 {offsets = [3, 0], sizes = [1, 128], strides = [1, 1]} : vector<16x128xf32> to vector<1x128xf32>
    %70 = vector.broadcast %69 : vector<1x128xf32> to vector<16x128xf32>
    %71 = arith.addf %68, %70 : vector<16x128xf32>
    %72 = arith.truncf %71 : vector<16x128xf32> to vector<16x128xbf16>
    %c704 = arith.constant 704 : index
    %c0_24 = arith.constant 0 : index
    %73 = vector.load %arg2[%c704, %c0_24] : memref<832x128xbf16, #tpu.memory_space<vmem>>, vector<128x128xbf16>
    %cst_25 = arith.constant dense<0.000000e+00> : vector<16x128xf32>
    %74 = tpu.matmul %72, %73, %cst_25 {dimension_numbers = #tpu.dot_dimension_numbers<[1], [0], [0], [1], [0, 0, 1, 1], [], []>} : vector<16x128xbf16>, vector<128x128xbf16>, vector<16x128xf32> -> vector<16x128xf32>
    %75 = vector.extract_strided_slice %1 {offsets = [4, 0], sizes = [1, 128], strides = [1, 1]} : vector<16x128xf32> to vector<1x128xf32>
    %76 = vector.broadcast %75 : vector<1x128xf32> to vector<16x128xf32>
    %77 = arith.addf %74, %76 : vector<16x128xf32>
    %cst_26 = arith.constant dense<0xFF800000> : vector<16xf32>
    %78 = vector.multi_reduction <maximumf>, %77, %cst_26 [1] : vector<16x128xf32> to vector<16xf32>
    %79 = vector.shape_cast %78 : vector<16xf32> to vector<16x1xf32>
    %80 = vector.broadcast %79 : vector<16x1xf32> to vector<16x128xf32>
    %81 = arith.subf %77, %80 : vector<16x128xf32>
    %82 = math.exp %81 : vector<16x128xf32>
    %cst_27 = arith.constant dense<0.000000e+00> : vector<16xf32>
    %83 = vector.multi_reduction <add>, %82, %cst_27 [1] : vector<16x128xf32> to vector<16xf32>
    %84 = vector.shape_cast %83 : vector<16xf32> to vector<16x1xf32>
    %85 = tpu.reciprocal %84 {approx = true} : vector<16x1xf32> -> vector<16x1xf32>
    %86 = vector.broadcast %85 : vector<16x1xf32> to vector<16x128xf32>
    %87 = arith.mulf %82, %86 : vector<16x128xf32>
    %c64_i32_28 = arith.constant 64 : i32
    %88 = tpu.dynamic_rotate %87 by %c64_i32_28 dim 1 : vector<16x128xf32>, i32 -> vector<16x128xf32>
    %89 = arith.addf %61, %88 : vector<16x128xf32>
    %c0_29 = arith.constant 0 : index
    %c0_30 = arith.constant 0 : index
    %90 = vector.load %arg4[%c0_29, %c0_30] : memref<16x128xf32, #tpu.memory_space<vmem>>, vector<16x128xf32>
    tpu.vector_store %arg4[%c0_29, %c0_30], %89 {strides = array<i32>} : memref<16x128xf32, #tpu.memory_space<vmem>>, vector<16x128xf32>,
    return
  }
  func.func @transform_0(%arg0: i32) -> (i32, i32) {
    %c0_i32 = arith.constant 0 : i32
    %c0_i32_0 = arith.constant 0 : i32
    return %arg0, %c0_i32 : i32, i32
  }
  func.func @transform_1(%arg0: i32) -> (i32, i32) {
    %c0_i32 = arith.constant 0 : i32
    %c0_i32_0 = arith.constant 0 : i32
    %c0_i32_1 = arith.constant 0 : i32
    return %c0_i32, %c0_i32_0 : i32, i32
  }
  func.func @transform_2(%arg0: i32) -> (i32, i32) {
    %c0_i32 = arith.constant 0 : i32
    %c0_i32_0 = arith.constant 0 : i32
    %c0_i32_1 = arith.constant 0 : i32
    return %c0_i32, %c0_i32_0 : i32, i32
  }
  func.func @transform_3(%arg0: i32) -> (i32, i32) {
    %c0_i32 = arith.constant 0 : i32
    %c0_i32_0 = arith.constant 0 : i32
    return %arg0, %c0_i32 : i32, i32
  }
}

</mosaic_0001>

<bundles_post_ra>
// kernel: embedding_forward_batch.1
= control target key start
LH: loop header
LB: loop body
LE: loop exit
PB: predicated region body
PF: predicated region fallthrough
CT: control target
= control target key end

     0   :  { %v1086_v0 = vmov 0   ;;  %v1087_v2 = vmov 0.0   ;;  %vm128_vm0 = vcmask 523264   ;;  %vm1088_vm1 = vmmov 0   ;;  %s1089_s7 = smov 64   ;;  %s1090_s22 = smov 8   ;;  %s1381_s1 = inlined_call_operand.vmem [shape: bf16[832,128], index: 1, kind: input, shape index: {}]   ;;  %s1382_s0 = inlined_call_operand.vmem [shape: bf16[16,192], index: 0, kind: input, shape index: {}]   ;;  %s1383_s2 = inlined_call_operand.vmem [shape: f32[16,128], index: 2, kind: input, shape index: {}]   ;;  %s1384_s3 = inlined_call_operand.vmem [shape: f32[16,128], index: 3, kind: output, shape index: {}]  }
   0x1   :  { %132 = vmatprep.subr.bf16.mxu0 %v1086_v0  ;;  %v1023_v1 = vld [vmem:[%s1381_s1 + $0x38] sm:$0xff]   ;;  %915 = vmatprep.subr.bf16.mxu1 %v1087_v2  ;;  %v1024_v3 = vld [vmem:[%s1381_s1 + $0x30] sm:$0xff]   ;;  %v1025_v4 = vld [vmem:[%s1381_s1 + $0x28] sm:$0xff]   ;;  %v43_v24 = vlaneseq  ;;  %s1091_s23 = smov 120   ;;  %s1092_s26 = smov 1  }
   0x2   :  { %133 = vmatpush1.bf16.msra.mxu0 %v1023_v1  ;;  %v1026_v5 = vld [vmem:[%s1381_s1 + $0x20] sm:$0xff]   ;;  %v1027_v6 = vld [vmem:[%s1381_s1 + $0x18] sm:$0xff]   ;;  %v1039_v9 = vld [vmem:[%s1381_s1 + $0x90] sm:$0xff]   ;;  %931 = vmatprep.mubr.msk.bf16.mxu1 %vm1088_vm1, %v1087_v2  ;;  %s1093_s27 = smov 127  }
   0x3   :  { %134 = vmatprep.subr.bf16.mxu0 %v1086_v0  ;;  %v1037_v7 = vld [vmem:[%s1382_s0 + $0x4] ss:$8 sps:$4 sm:$0xff]   ;;  %v1038_v8 = vld [vmem:[%s1381_s1 + $0x98] sm:$0xff]   ;;  %v1028_v10 = vld [vmem:[%s1381_s1 + $0x10] sm:$0xff]   ;;  %v1206_v25 = vshrl.u32 %v43_v24, 7 }
   0x4   :  { %829 = vmatprep.mubr.msk.bf16.mxu0 %vm128_vm0, %v1037_v7  ;;  %916 = vmatpush3.bf16.msra.mxu1 %v1038_v8  ;;  %v1040_v11 = vld [vmem:[%s1381_s1 + $0x88] sm:$0xff]   ;;  %v1041_v13 = vld [vmem:[%s1381_s1 + $0x80] sm:$0xff]   ;;  %v1042_v15 = vld [vmem:[%s1381_s1 + $0x78] sm:$0xff]  }
   0x5   :  { %917 = vmatprep.subr.bf16.mxu1 %v1087_v2  ;;  %v1029_v12 = vld [vmem:[%s1381_s1 + $0x8] sm:$0xff]   ;;  %v1030_v14 = vld [vmem:[%s1381_s1] sm:$0xff]   ;;  %v1031_v16 = vld [vmem:[%s1381_s1 + $0x58] sm:$0xff]   ;;  %v45_v26 = vsub.s32 0, %v1206_v25  ;;  %v194_v52 = vsub.s32 1, %v1206_v25 }
   0x6   :  { %135 = vmatpush1.bf16.msra.mxu0 %v1024_v3  ;;  %v1032_v17 = vld [vmem:[%s1381_s1 + $0x50] sm:$0xff]   ;;  %v1033_v18 = vld [vmem:[%s1381_s1 + $0x48] sm:$0xff]   ;;  %v1034_v19 = vld [vmem:[%s1381_s1 + $0x40] sm:$0xff]   ;;  %v306_v3 = vsub.s32 2, %v1206_v25 }
   0x7   :  { %136 = vmatprep.subr.bf16.mxu0 %v1086_v0  ;;  %v1035_v20 = vld [vmem:[%s1382_s0] ss:$8 sps:$4 sm:$0xff]   ;;  %v1043_v21 = vld [vmem:[%s1381_s1 + $0x70] sm:$0xff]   ;;  %v1046_v37 = vld [vmem:[%s1381_s1 + $0xd8] sm:$0xff]  }
   0x8   :  { %918 = vmatpush3.bf16.msra.mxu1 %v1039_v9  ;;  %v1044_v22 = vld [vmem:[%s1381_s1 + $0x68] sm:$0xff]   ;;  %v1045_v23 = vld [vmem:[%s1381_s1 + $0x60] sm:$0xff]   ;;  %v1047_v39 = vld [vmem:[%s1381_s1 + $0xd0] sm:$0xff]  }
   0x9   :  { %919 = vmatprep.subr.bf16.mxu1 %v1087_v2  ;;  %v1212_v27 = vld [vmem:[%s1383_s2] sm:$0xff]  ;;  %v1048_v40 = vld [vmem:[%s1381_s1 + $0xc8] sm:$0xff]   ;;  %v1050_v42 = vld [vmem:[%s1381_s1 + $0xb8] sm:$0xff]  }
   0xa   :  { %137 = vmatpush1.bf16.msra.mxu0 %v1025_v4  ;;  %v46_v28 = vrot.slane %v1212_v27, %v45_v26  ;;  %v1049_v41 = vld [vmem:[%s1381_s1 + $0xc0] sm:$0xff]   ;;  %v1051_v43 = vld [vmem:[%s1381_s1 + $0xb0] sm:$0xff]   ;;  %v1052_v44 = vld [vmem:[%s1381_s1 + $0xa8] sm:$0xff]   ;;  %v195_v53 = vrot.slane %v1212_v27, %v194_v52  ;;  %v307_v4 = vrot.slane %v1212_v27, %v306_v3 }
   0xb   :  { %138 = vmatprep.subr.bf16.mxu0 %v1086_v0  ;;  %v1053_v45 = vld [vmem:[%s1381_s1 + $0xa0] sm:$0xff]   ;;  %v1054_v46 = vld [vmem:[%s1381_s1 + $0x158] sm:$0xff]   ;;  %v1055_v47 = vld [vmem:[%s1381_s1 + $0x150] sm:$0xff]  }
   0xc   :  { %920 = vmatpush3.bf16.msra.mxu1 %v1040_v11  ;;  %v1056_v48 = vld [vmem:[%s1381_s1 + $0x148] sm:$0xff]   ;;  %v1057_v49 = vld [vmem:[%s1381_s1 + $0x140] sm:$0xff]   ;;  %v1058_v50 = vld [vmem:[%s1381_s1 + $0x138] sm:$0xff]  }
   0xd   :  { %921 = vmatprep.subr.bf16.mxu1 %v1087_v2  ;;  %v1059_v51 = vld [vmem:[%s1381_s1 + $0x130] sm:$0xff]   ;;  %v1060_v63 = vld [vmem:[%s1381_s1 + $0x128] sm:$0xff]   ;;  %v1061_v1 = vld [vmem:[%s1381_s1 + $0x120] sm:$0xff]  }
   0xe   :  { %139 = vmatpush1.bf16.msra.mxu0 %v1026_v5  ;;  %v1070_v24 = vld [vmem:[%s1381_s1 + $0x198] sm:$0xff]  }
   0xf   :  { %140 = vmatprep.subr.bf16.mxu0 %v1086_v0 }
  0x10   :  { %922 = vmatpush3.bf16.msra.mxu1 %v1041_v13  ;;  %v1063_v13 = vld [vmem:[%s1381_s1 + $0x110] sm:$0xff]  }
  0x11   :  { %923 = vmatprep.subr.bf16.mxu1 %v1087_v2 }
  0x12   :  { %141 = vmatpush1.bf16.msra.mxu0 %v1027_v6 }
  0x13   :  { %142 = vmatprep.subr.bf16.mxu0 %v1086_v0 }
  0x14   :  { %924 = vmatpush3.bf16.msra.mxu1 %v1042_v15  ;;  %v1065_v15 = vld [vmem:[%s1381_s1 + $0x100] sm:$0xff]  }
  0x15   :  { %925 = vmatprep.subr.bf16.mxu1 %v1087_v2 }
  0x16   :  { %143 = vmatpush1.bf16.msra.mxu0 %v1028_v10 }
  0x17   :  { %144 = vmatprep.subr.bf16.mxu0 %v1086_v0 }
  0x18   :  { %926 = vmatpush3.bf16.msra.mxu1 %v1043_v21 }
  0x19   :  { %927 = vmatprep.subr.bf16.mxu1 %v1087_v2 }
  0x1a   :  { %145 = vmatpush1.bf16.msra.mxu0 %v1029_v12  ;;  %v1062_v12 = vld [vmem:[%s1381_s1 + $0x118] sm:$0xff]  }
  0x1b   :  { %146 = vmatprep.subr.bf16.mxu0 %v1086_v0 }
  0x1c   :  { %928 = vmatpush3.bf16.msra.mxu1 %v1044_v22 }
  0x1d   :  { %929 = vmatprep.subr.bf16.mxu1 %v1087_v2 }
  0x1e   :  { %147 = vmatpush1.bf16.msra.mxu0 %v1030_v14  ;;  %v1064_v14 = vld [vmem:[%s1381_s1 + $0x108] sm:$0xff]  }
  0x1f   :  { %156 = vmatprep.subr.bf16.mxu0 %v1086_v0 }
  0x20   :  { %930 = vmatpush3.bf16.msra.mxu1 %v1045_v23  ;;  %v1069_v23 = vld [vmem:[%s1381_s1 + $0xe0] sm:$0xff]  }
  0x21   :  { %935 = vmatprep.subr.bf16.mxu1 %v1087_v2 }
  0x22   :  { %157 = vmatpush2.bf16.msra.mxu0 %v1031_v16  ;;  %v1066_v16 = vld [vmem:[%s1381_s1 + $0xf8] sm:$0xff]  }
  0x23   :  { %158 = vmatprep.subr.bf16.mxu0 %v1086_v0 }
  0x26   :  { %159 = vmatpush2.bf16.msra.mxu0 %v1032_v17  ;;  %v1067_v17 = vld [vmem:[%s1381_s1 + $0xf0] sm:$0xff]  }
  0x27   :  { %160 = vmatprep.subr.bf16.mxu0 %v1086_v0 }
  0x2a   :  { %161 = vmatpush2.bf16.msra.mxu0 %v1033_v18 }
  0x2b   :  { %162 = vmatprep.subr.bf16.mxu0 %v1086_v0 }
  0x2e   :  { %163 = vmatpush2.bf16.msra.mxu0 %v1034_v19 }
  0x2f   :  { %955 = vmatprep.subr.bf16.mxu0 %v1087_v2 }
  0x31   :  { %165 = vmatmul.mubr.bf16.vlgmr.msra.gmra.mxu0 %v1035_v20  ;;  %v1068_v20 = vld [vmem:[%s1381_s1 + $0xe8] sm:$0xff]  }
  0x32   :  { %971 = vmatprep.mubr.msk.bf16.mxu0 %vm1088_vm1, %v1087_v2  ;;  %956 = vmatpush3.bf16.msra.mxu0 %v1054_v46 }
  0x33   :  { %957 = vmatprep.subr.bf16.mxu0 %v1087_v2 }
  0x36   :  { %958 = vmatpush3.bf16.msra.mxu0 %v1055_v47 }
  0x37   :  { %959 = vmatprep.subr.bf16.mxu0 %v1087_v2 }
  0x3a   :  { %960 = vmatpush3.bf16.msra.mxu0 %v1056_v48 }
  0x3b   :  { %961 = vmatprep.subr.bf16.mxu0 %v1087_v2 }
  0x3e   :  { %962 = vmatpush3.bf16.msra.mxu0 %v1057_v49 }
  0x3f   :  { %963 = vmatprep.subr.bf16.mxu0 %v1087_v2 }
  0x42   :  { %964 = vmatpush3.bf16.msra.mxu0 %v1058_v50 }
  0x43   :  { %965 = vmatprep.subr.bf16.mxu0 %v1087_v2 }
  0x46   :  { %966 = vmatpush3.bf16.msra.mxu0 %v1059_v51 }
  0x47   :  { %967 = vmatprep.subr.bf16.mxu0 %v1087_v2 }
  0x4a   :  { %968 = vmatpush3.bf16.msra.mxu0 %v1060_v63 }
  0x4b   :  { %969 = vmatprep.subr.bf16.mxu0 %v1087_v2 }
  0x4e   :  { %970 = vmatpush3.bf16.msra.mxu0 %v1061_v1 }
  0x4f   :  { %995 = vmatprep.subr.bf16.mxu0 %v1087_v2 }
  0xf1   :  { %v166_v29 = vpop.f32.mrf.mxu0 }
  0xf2   :  { %v167_v31 = vadd.f32 %v166_v29, %v46_v28  ;;  %v1072_v29 = vld [vmem:[%s1381_s1 + $0x188] sm:$0xff]  }
  0xf3   :  { %v168_v30 = vpop.f32.mrf.mxu0 }
  0xf4   :  { %v173_v35 = vmax.f32 %v167_v31, 0.0  ;;  %v1073_v30 = vld [vmem:[%s1381_s1 + $0x180] sm:$0xff]   ;;  %v1074_v31 = vld [vmem:[%s1381_s1 + $0x178] sm:$0xff]  }
  0xf5   :  { %v169_v32 = vpop.f32.mrf.mxu0 }
  0xf6   :  { %v170_v33 = vadd.f32 %v169_v32, %v46_v28  ;;  %v1071_v28 = vld [vmem:[%s1381_s1 + $0x190] sm:$0xff]  }
  0xf7   :  { %v171_v34 = vpop.f32.mrf.mxu0 }
  0xf8   :  { %v174_v36 = vmax.f32 %v170_v33, 0.0 }
  0xfa   :  { %v175_v38 = vpack.c.bf16 %v174_v36, %v173_v35  ;;  %v18_v36 = vld [vmem:[%s1383_s2 + $0x8] sm:$0xff] }
  0xfb   :  { %vm407_vm2 = vcmp.gt.f32.partialorder %v18_v36, 0.5 }
  0xfc   :  { %932 = vmatmul.mubr.bf16.vlgmr.msra.gmra.mxu1 %v175_v38 }
  0xfd   :  { %936 = vmatpush3.bf16.msra.mxu1 %v1046_v37  ;;  %951 = vmatprep.mubr.msk.bf16.mxu1 %vm1088_vm1, %v1087_v2 }
  0xfe   :  { %937 = vmatprep.subr.bf16.mxu1 %v1087_v2 }
 0x101   :  { %938 = vmatpush3.bf16.msra.mxu1 %v1047_v39  ;;  %v410_v39 = vsel %vm407_vm2, 1, %v1086_v0 }
 0x102   :  { %939 = vmatprep.subr.bf16.mxu1 %v1087_v2  ;;  %v440_v47 = vrot.slane %v410_v39, %v306_v3 }
 0x104   :  { %vm441_vm5 = vcmp.eq.s32.totalorder %v440_v47, 1 }
 0x105   :  { %940 = vmatpush3.bf16.msra.mxu1 %v1048_v40 }
 0x106   :  { %941 = vmatprep.subr.bf16.mxu1 %v1087_v2 }
 0x109   :  { %942 = vmatpush3.bf16.msra.mxu1 %v1049_v41 }
 0x10a   :  { %943 = vmatprep.subr.bf16.mxu1 %v1087_v2 }
 0x10d   :  { %944 = vmatpush3.bf16.msra.mxu1 %v1050_v42  ;;  %v414_v42 = vrot.slane %v410_v39, %v45_v26 }
 0x10e   :  { %945 = vmatprep.subr.bf16.mxu1 %v1087_v2 }
 0x10f   :  { %vm415_vm3 = vcmp.eq.s32.totalorder %v414_v42, 1 }
 0x111   :  { %946 = vmatpush3.bf16.msra.mxu1 %v1051_v43 }
 0x112   :  { %947 = vmatprep.subr.bf16.mxu1 %v1087_v2 }
 0x115   :  { %948 = vmatpush3.bf16.msra.mxu1 %v1052_v44  ;;  %v452_v44 = vsub.s32 3, %v1206_v25 }
 0x116   :  { %949 = vmatprep.subr.bf16.mxu1 %v1087_v2 }
 0x117   :  { %v453_v49 = vrot.slane %v410_v39, %v452_v44 }
 0x119   :  { %950 = vmatpush3.bf16.msra.mxu1 %v1053_v45  ;;  %v427_v45 = vrot.slane %v410_v39, %v194_v52  ;;  %vm454_vm6 = vcmp.eq.s32.totalorder %v453_v49, 1 }
 0x11a   :  { %975 = vmatprep.subr.bf16.mxu1 %v1087_v2 }
 0x11b   :  { %vm428_vm4 = vcmp.eq.s32.totalorder %v427_v45, 1 }
 0x1bc   :  { %v278_v54 = vpop.f32.mrf.mxu1 }
 0x1bd   :  { %v279_v56 = vadd.f32 %v278_v54, %v195_v53 }
 0x1be   :  { %v933_v55 = vpop.f32.mrf.mxu1 }
 0x1bf   :  { %v285_v60 = vmax.f32 %v279_v56, 0.0 }
 0x1c0   :  { %v281_v57 = vpop.f32.mrf.mxu1 }
 0x1c1   :  { %v282_v58 = vadd.f32 %v281_v57, %v195_v53 }
 0x1c2   :  { %v934_v59 = vpop.f32.mrf.mxu1 }
 0x1c3   :  { %v286_v61 = vmax.f32 %v282_v58, 0.0 }
 0x1c5   :  { %v287_v62 = vpack.c.bf16 %v286_v61, %v285_v60 }
 0x1c7   :  { %952 = vmatmul.mubr.bf16.vlgmr.msra.gmra.mxu1 %v287_v62 }
 0x1c8   :  { %991 = vmatprep.mubr.msk.bf16.mxu1 %vm1088_vm1, %v1087_v2  ;;  %976 = vmatpush3.bf16.msra.mxu1 %v1062_v12 }
 0x1c9   :  { %977 = vmatprep.subr.bf16.mxu1 %v1087_v2 }
 0x1cc   :  { %978 = vmatpush3.bf16.msra.mxu1 %v1063_v13 }
 0x1cd   :  { %979 = vmatprep.subr.bf16.mxu1 %v1087_v2 }
 0x1d0   :  { %980 = vmatpush3.bf16.msra.mxu1 %v1064_v14 }
 0x1d1   :  { %981 = vmatprep.subr.bf16.mxu1 %v1087_v2 }
 0x1d4   :  { %982 = vmatpush3.bf16.msra.mxu1 %v1065_v15 }
 0x1d5   :  { %983 = vmatprep.subr.bf16.mxu1 %v1087_v2 }
 0x1d8   :  { %984 = vmatpush3.bf16.msra.mxu1 %v1066_v16 }
 0x1d9   :  { %985 = vmatprep.subr.bf16.mxu1 %v1087_v2 }
 0x1dc   :  { %986 = vmatpush3.bf16.msra.mxu1 %v1067_v17  ;;  %v694_v17 = vsub.s32 4, %v1206_v25 }
 0x1dd   :  { %987 = vmatprep.subr.bf16.mxu1 %v1087_v2 }
 0x1e0   :  { %988 = vmatpush3.bf16.msra.mxu1 %v1068_v20 }
 0x1e1   :  { %989 = vmatprep.subr.bf16.mxu1 %v1087_v2 }
 0x1e4   :  { %990 = vmatpush3.bf16.msra.mxu1 %v1069_v23 }
 0x287   :  { %v390_v5 = vpop.f32.mrf.mxu1 }
 0x288   :  { %v391_v6 = vadd.f32 %v390_v5, %v307_v4  ;;  %v1076_v5 = vld [vmem:[%s1381_s1 + $0x168] sm:$0xff]  }
 0x289   :  { %v953_v7 = vpop.f32.mrf.mxu1 }
 0x28a   :  { %397 = vrot.lane.b32.xlu0 %v391_v6, %s1089_s7 }
 0x28b   :  { %v393_v8 = vpop.f32.mrf.mxu1 }
 0x28c   :  { %v394_v9 = vadd.f32 %v393_v8, %v307_v4  ;;  %v1075_v4 = vld [vmem:[%s1381_s1 + $0x170] sm:$0xff]  }
 0x28d   :  { %v954_v10 = vpop.f32.mrf.mxu1 }
 0x28e   :  { %v474_v11 = vpack.c.bf16 %v394_v9, %v391_v6  ;;  %399 = vrot.lane.b32.xlu0 %v394_v9, %s1089_s7  ;;  %v672_v10 = vrot.slane %v1212_v27, %v452_v44 }
 0x290   :  { %972 = vmatmul.mubr.bf16.vlgmr.msra.gmra.mxu0 %v474_v11 }
 0x291   :  { %1011 = vmatprep.mubr.msk.bf16.mxu0 %vm1088_vm1, %v1087_v2  ;;  %996 = vmatpush3.bf16.msra.mxu0 %v1070_v24 }
 0x292   :  { %997 = vmatprep.subr.bf16.mxu0 %v1087_v2 }
 0x295   :  { %998 = vmatpush3.bf16.msra.mxu0 %v1071_v28 }
 0x296   :  { %999 = vmatprep.subr.bf16.mxu0 %v1087_v2 }
 0x299   :  { %1000 = vmatpush3.bf16.msra.mxu0 %v1072_v29 }
 0x29a   :  { %1001 = vmatprep.subr.bf16.mxu0 %v1087_v2 }
 0x29d   :  { %1002 = vmatpush3.bf16.msra.mxu0 %v1073_v30 }
 0x29e   :  { %1003 = vmatprep.subr.bf16.mxu0 %v1087_v2 }
 0x2a1   :  { %1004 = vmatpush3.bf16.msra.mxu0 %v1074_v31 }
 0x2a2   :  { %1005 = vmatprep.subr.bf16.mxu0 %v1087_v2 }
 0x2a5   :  { %1006 = vmatpush3.bf16.msra.mxu0 %v1075_v4 }
 0x2a6   :  { %1007 = vmatprep.subr.bf16.mxu0 %v1087_v2 }
 0x2a9   :  { %1008 = vmatpush3.bf16.msra.mxu0 %v1076_v5 }
 0x2aa   :  { %1009 = vmatprep.subr.bf16.mxu0 %v1087_v2  ;;  %v695_v2 = vrot.slane %v1212_v27, %v694_v17 }
 0x2fc   :  { %v398_v18 = vpop.permute.xlu0 %397 }
 0x2fd   :  { %v401_v19 = vsub.f32 %v398_v18, %v391_v6  ;;  %v1077_v6 = vld [vmem:[%s1381_s1 + $0x160] sm:$0xff]  }
 0x2fe   :  { %1010 = vmatpush3.bf16.msra.mxu0 %v1077_v6 }
 0x2ff   :  { %403 = vrot.lane.b32.xlu1 %v401_v19, %s1090_s22  ;;  %418 = vrot.lane.b32.xlu0 %v401_v19, %s1091_s23 }
 0x300   :  { %v400_v21 = vpop.permute.xlu0 %399 }
 0x301   :  { %v402_v22 = vsub.f32 %v400_v21, %v394_v9 }
 0x303   :  { %431 = vrot.lane.b32.xlu0 %v401_v19, %s1092_s26  ;;  %405 = vrot.lane.b32.xlu1 %v402_v22, %s1090_s22 }
 0x307   :  { %444 = vrot.lane.b32.xlu0 %v401_v19, %s1093_s27  ;;  %420 = vrot.lane.b32.xlu1 %v402_v22, %s1091_s23 }
 0x30b   :  { %433 = vrot.lane.b32.xlu1 %v402_v22, %s1092_s26 }
 0x30f   :  { %446 = vrot.lane.b32.xlu1 %v402_v22, %s1093_s27 }
 0x350   :  { %v573_v32 = vpop.f32.mrf.mxu0 }
 0x352   :  { %v973_v33 = vpop.f32.mrf.mxu0 }
 0x354   :  { %v576_v34 = vpop.f32.mrf.mxu0 }
 0x356   :  { %v974_v35 = vpop.f32.mrf.mxu0 }
 0x371   :  { %v404_v37 = vpop.permute.xlu1 %403  ;;  %v419_v38 = vpop.permute.xlu0 %418 }
 0x372   :  { %v408_v46 = vmax.f32 %v404_v37, 0.0  ;;  %v422_v51 = vmax.f32 %v419_v38, 0.0 }
 0x374   :  { %v416_v54 = vsel %vm415_vm3, %v408_v46, 0.0 }
 0x375   :  { %v406_v40 = vpop.permute.xlu1 %405  ;;  %v432_v41 = vpop.permute.xlu0 %431  ;;  %v429_v58 = vsel %vm428_vm4, %v422_v51, %v416_v54 }
 0x376   :  { %v409_v48 = vmax.f32 %v406_v40, 0.0  ;;  %v435_v26 = vmax.f32 %v432_v41, 0.0 }
 0x378   :  { %v417_v57 = vsel %vm415_vm3, %v409_v48, 0.0  ;;  %v442_v61 = vsel %vm441_vm5, %v435_v26, %v429_v58 }
 0x379   :  { %v421_v43 = vpop.permute.xlu1 %420  ;;  %v445_v50 = vpop.permute.xlu0 %444 }
 0x37a   :  { %v423_v53 = vmax.f32 %v421_v43, 0.0  ;;  %v448_v56 = vmax.f32 %v445_v50, 0.0 }
 0x37c   :  { %v430_v59 = vsel %vm428_vm4, %v423_v53, %v417_v57  ;;  %v455_v63 = vsel %vm454_vm6, %v448_v56, %v442_v61 }
 0x37d   :  { %v434_v0 = vpop.permute.xlu1 %433 }
 0x37e   :  { %v436_v55 = vmax.f32 %v434_v0, 0.0 }
 0x380   :  { %v443_v62 = vsel %vm441_vm5, %v436_v55, %v430_v59 }
 0x381   :  { %v447_v52 = vpop.permute.xlu1 %446 }
 0x382   :  { %v449_v60 = vmax.f32 %v447_v52, 0.0 }
 0x384   :  { %v456_v1 = vsel %vm454_vm6, %v449_v60, %v443_v62 }
 0x385   :  { %v457_v3 = vpack.c.bf16 %v456_v1, %v455_v63 }
 0x387   :  { %992 = vmatmul.mubr.bf16.vlgmr.msra.gmra.mxu1 %v457_v3 }
 0x447   :  { %v662_v7 = vpop.f32.mrf.mxu1 }
 0x448   :  { %v663_v9 = vadd.f32 %v662_v7, %v573_v32 }
 0x449   :  { %v993_v8 = vpop.f32.mrf.mxu1 }
 0x44a   :  { %v673_v14 = vadd.f32 %v672_v10, %v663_v9 }
 0x44b   :  { %v665_v11 = vpop.f32.mrf.mxu1 }
 0x44c   :  { %v666_v12 = vadd.f32 %v665_v11, %v576_v34 }
 0x44d   :  { %v994_v13 = vpop.f32.mrf.mxu1 }
 0x44e   :  { %v674_v15 = vadd.f32 %v672_v10, %v666_v12 }
 0x450   :  { %v675_v16 = vpack.c.bf16 %v674_v15, %v673_v14 }
 0x452   :  { %1012 = vmatmul.mubr.bf16.vlgmr.msra.gmra.mxu0 %v675_v16 }
 0x512   :  { %v778_v18 = vpop.f32.mrf.mxu0 }
 0x513   :  { %v779_v19 = vadd.f32 %v778_v18, %v695_v2 }
 0x514   :  { %v1013_v20 = vpop.f32.mrf.mxu0 }
 0x515   :  { %785 = vmax.xlane.f32.xlu0 %v779_v19 }
 0x516   :  { %v781_v21 = vpop.f32.mrf.mxu0 }
 0x517   :  { %v782_v22 = vadd.f32 %v781_v21, %v695_v2 }
 0x518   :  { %v1014_v23 = vpop.f32.mrf.mxu0 }
 0x519   :  { %787 = vmax.xlane.f32.xlu1 %v782_v22 }
 0x59e   :  { %v786_v24 = vpop.xlane.xlu0 %785 }
 0x59f   :  { %v789_v28 = vsub.f32 %v779_v19, %v786_v24 }
 0x5a1   :  { %v791_v29 = vmul.f32 1.442695, %v789_v28 }
 0x5a2   :  { %v788_v30 = vpop.xlane.xlu1 %787 }
 0x5a3   :  { %1078 = vpow2.f32 %v791_v29  ;;  %v790_v31 = vsub.f32 %v782_v22, %v788_v30 }
 0x5a5   :  { %v793_v32 = vmul.f32 1.442695, %v790_v31 }
 0x5a7   :  { %1080 = vpow2.f32 %v793_v32 }
 0x5b0   :  { %v1079_v33 = vpop.eup %1078 }
 0x5b1   :  { %795 = vadd.xlane.f32.xlu0 %v1079_v33 }
 0x5b4   :  { %v1081_v25 = vpop.eup %1080 }
 0x5b5   :  { %797 = vadd.xlane.f32.xlu0 %v1081_v25 }
 0x63a   :  { %v796_v27 = vpop.xlane.xlu0 %795 }
 0x63b   :  { %1082 = vrcp.f32 %v796_v27 }
 0x63e   :  { %v798_v34 = vpop.xlane.xlu0 %797 }
 0x63f   :  { %1084 = vrcp.f32 %v798_v34 }
 0x648   :  { %v1083_v35 = vpop.eup %1082 }
 0x649   :  { %v801_v36 = vmul.f32 %v1083_v35, %v1079_v33 }
 0x64b   :  { %803 = vrot.lane.b32.xlu1 %v801_v36, %s1089_s7 }
 0x64c   :  { %v1085_v37 = vpop.eup %1084 }
 0x64d   :  { %v802_v38 = vmul.f32 %v1085_v37, %v1081_v25 }
 0x64f   :  { %805 = vrot.lane.b32.xlu0 %v802_v38, %s1089_s7 }
 0x6bd   :  { %v804_v39 = vpop.permute.xlu1 %803 }
 0x6be   :  { %v807_v40 = vadd.f32 %v804_v39, %v455_v63 }
 0x6c0   :  { %809 = vst [vmem:[%s1384_s3] sm:$0xff] %v807_v40 }
 0x6c1   :  { %v806_v41 = vpop.permute.xlu0 %805 }
 0x6c2   :  { %v808_v42 = vadd.f32 %v806_v41, %v456_v1 }
 0x6c4   :  { %810 = vst [vmem:[%s1384_s3 + $0x8] sm:$0xff] %v808_v42 }

</bundles_post_ra>
